<compile_context>
chip_gen: v5e
topology: v5e:2x2
jax: 0.10.0
libtpu: 0.0.40
codegen_flags: <defaults>
</compile_context>

<pallas_src>
import functools

import jax
import jax.numpy as jnp
from jax.experimental import pallas as pl
from jax.experimental.pallas import tpu as pltpu


def _slice_left_kernel(x_ref, mask_ref, fill_ref, o_ref):
    """out = img * mask + mask_2, with (1, n_cols) rows broadcast over sublanes."""
    o_ref[...] = x_ref[...] * mask_ref[...] + fill_ref[...]


def _choose_block_rows(n_rows, row_bytes, *, target_bytes=4 << 20,
                       min_steps=4, min_tile_bytes=1 << 20):
    """Pick a multiple-of-8 row count: ~4 MiB tiles, >=4 steps when worthwhile,
    divisor-of-n_rows preferred (no sliver tail block)."""
    rows = max((target_bytes // max(row_bytes, 1)) // 8 * 8, 8)
    # Guarantee >= min_steps grid iterations when each step would still move
    # >= min_tile_bytes (v7x has 2 TensorCores sharing the "parallel" axis).
    if n_rows * row_bytes >= min_steps * min_tile_bytes:
        cap = max((n_rows // min_steps) // 8 * 8, 8)
        rows = min(rows, cap)
    if rows >= n_rows:
        return n_rows  # full-extent block dim is always legal
    # Prefer a divisor of n_rows within 2x of the target tile size.
    if n_rows % rows:
        for cand in range(rows, max(rows // 2, 8) - 1, -8):
            if n_rows % cand == 0:
                return cand
    return rows
    # NOTE: extremely wide images (H*W*itemsize >> 512 KiB per row) would also
    # need column tiling to stay within VMEM; not needed at this module's sizes.


@functools.partial(jax.jit, static_argnames=("in_place",))
def _slice_left_impl(img, crop, *, in_place=False):
    """Jitted core: shapes static, crop traced (no recompile across crop values)."""
    N, C, H, W = img.shape
    n_rows, n_cols = N * C, H * W
    x = img.reshape(n_rows, n_cols)  # lane-dense last dim (H*W), not narrow W

    # Precomputed (1, H*W) mask rows built from the traced crop scalar.
    col = jnp.tile(jnp.arange(W, dtype=jnp.int32), H).reshape(1, n_cols)
    keep = col >= crop
    mask_row = keep.astype(img.dtype)                                   # 1 keep / 0 cropped
    fill_row = jnp.where(keep, jnp.float32(0.0), jnp.float32(0.5)).astype(img.dtype)

    rows = _choose_block_rows(n_rows, n_cols * img.dtype.itemsize)
    grid = (pl.cdiv(n_rows, rows),)

    extra = {}
    if in_place:
        # Flat input 0 (= x) aliases output 0.  Every output byte is written,
        # so this is always numerically correct; it only saves HBM footprint
        # when the caller actually donates the input buffer.
        extra["input_output_aliases"] = {0: 0}

    out = pl.pallas_call(
        _slice_left_kernel,
        out_shape=jax.ShapeDtypeStruct((n_rows, n_cols), img.dtype),
        grid=grid,
        in_specs=[
            pl.BlockSpec((rows, n_cols), lambda i: (i, 0)),   # streaming image tile
            pl.BlockSpec((1, n_cols), lambda i: (0, 0)),      # mask row (constant block)
            pl.BlockSpec((1, n_cols), lambda i: (0, 0)),      # fill row (constant block)
        ],
        out_specs=pl.BlockSpec((rows, n_cols), lambda i: (i, 0)),
        compiler_params=pltpu.CompilerParams(
            dimension_semantics=("parallel",),        # v7x: shard rows across both TCs
            vmem_limit_bytes=32 * 1024 * 1024,        # 4 x ~4 MiB buffers + headroom
        ),
        **extra,
    )(x, mask_row, fill_row)
    return out.reshape(N, C, H, W)


def slice_left(img: jax.Array, crop_percentage: float, *, in_place: bool = False) -> jax.Array:
    """Pallas implementation of SliceLeft.forward for NCHW floating-point input."""
    crop_percentage = min(max(float(crop_percentage), 0.0), 1.0)
    W = img.shape[3]
    crop = int(W * crop_percentage)
    if crop == 0:
        return img  # PyTorch returns the input unchanged when nothing is cropped
    return _slice_left_impl(img, jnp.int32(crop), in_place=in_place)


def _reference(img, crop_percentage):
    """Pure-JAX mirror of the PyTorch module (finite-input semantics)."""
    crop_percentage = min(max(float(crop_percentage), 0.0), 1.0)
    W = img.shape[3]
    crop = int(W * crop_percentage)
    if crop == 0:
        return img
    keep = jnp.arange(W) >= crop
    mask = keep.astype(img.dtype)[None, None, None, :]
    mask2 = jnp.where(keep, 0.0, 0.5).astype(img.dtype)[None, None, None, :]
    return img * mask + mask2


if __name__ == "__main__":
    key = jax.random.PRNGKey(0)
    N, C, H, W = 2, 4, 16, 16
    img = jax.random.normal(key, (N, C, H, W), dtype=jnp.float32)

    crop_percentage = 0.3  # -> crop = int(16 * 0.3) = 4 columns become 0.5
    out = jax.block_until_ready(slice_left(img, crop_percentage))
    ref = _reference(img, crop_percentage)
    assert out.shape == img.shape and out.dtype == img.dtype
    assert jnp.allclose(out, ref, atol=1e-6), "mismatch vs reference"
    # Cropped columns are exactly 0.5; kept columns pass through bit-exactly.
    assert jnp.all(out[..., :4] == jnp.float32(0.5))
    assert jnp.array_equal(out[..., 4:], img[..., 4:])

    # NaN in a *kept* column must survive.  (NaN in a cropped column is
    # intentionally not asserted: compilers may fold x*0 + 0.5 -> 0.5, which is
    # what broke the previous revision's over-strict check.)
    img_nan = img.at[0, 0, 3, 9].set(jnp.nan)  # column 9 >= crop
    out_nan = jax.block_until_ready(slice_left(img_nan, crop_percentage))
    assert bool(jnp.isnan(out_nan[0, 0, 3, 9]))
    assert jnp.allclose(out_nan, _reference(img_nan, crop_percentage),
                        atol=1e-6, equal_nan=True)

    # crop == 0 early-return path.
    out0 = jax.block_until_ready(slice_left(img, 0.0))
    assert jnp.array_equal(out0, img)

    # A different crop value reuses the same compiled kernel (the mask rows are
    # runtime data derived from the traced crop scalar, not constants).
    out2 = jax.block_until_ready(slice_left(img, 0.6))
    assert jnp.allclose(out2, _reference(img, 0.6), atol=1e-6)

    print("KERNEL_OK")
</pallas_src>

<mosaic_0001>
module attributes {stable_mosaic.version = 11 : i64} {
  func.func @_slice_left_kernel(%arg0: i32, %arg1: memref<8x256xf32, #tpu.memory_space<vmem>>, %arg2: memref<1x256xf32, #tpu.memory_space<vmem>>, %arg3: memref<1x256xf32, #tpu.memory_space<vmem>>, %arg4: memref<8x256xf32, #tpu.memory_space<vmem>>) attributes {dimension_semantics = [#tpu.dimension_semantics<parallel>], iteration_bounds = array<i64: 1>, scalar_prefetch = 0 : i64, scratch_operands = 0 : i64, tpu.core_type = #tpu.core_type<tc>, window_params = [{transform_indices = @transform_0, window_bounds = array<i64: 8, 256>}, {pipeline_mode = #tpu.pipeline_mode<synchronous>, transform_indices = @transform_1, window_bounds = array<i64: 1, 256>}, {pipeline_mode = #tpu.pipeline_mode<synchronous>, transform_indices = @transform_2, window_bounds = array<i64: 1, 256>}, {transform_indices = @transform_3, window_bounds = array<i64: 8, 256>}]} {
    %c0 = arith.constant 0 : index
    %c0_0 = arith.constant 0 : index
    %0 = vector.load %arg1[%c0, %c0_0] : memref<8x256xf32, #tpu.memory_space<vmem>>, vector<8x256xf32>
    %c0_1 = arith.constant 0 : index
    %c0_2 = arith.constant 0 : index
    %1 = vector.load %arg2[%c0_1, %c0_2] : memref<1x256xf32, #tpu.memory_space<vmem>>, vector<1x256xf32>
    %2 = vector.broadcast %1 : vector<1x256xf32> to vector<8x256xf32>
    %3 = arith.mulf %0, %2 : vector<8x256xf32>
    %c0_3 = arith.constant 0 : index
    %c0_4 = arith.constant 0 : index
    %4 = vector.load %arg3[%c0_3, %c0_4] : memref<1x256xf32, #tpu.memory_space<vmem>>, vector<1x256xf32>
    %5 = vector.broadcast %4 : vector<1x256xf32> to vector<8x256xf32>
    %6 = arith.addf %3, %5 : vector<8x256xf32>
    %c0_5 = arith.constant 0 : index
    %c0_6 = arith.constant 0 : index
    %7 = vector.load %arg4[%c0_5, %c0_6] : memref<8x256xf32, #tpu.memory_space<vmem>>, vector<8x256xf32>
    tpu.vector_store %arg4[%c0_5, %c0_6], %6 {strides = array<i32>} : memref<8x256xf32, #tpu.memory_space<vmem>>, vector<8x256xf32>,
    return
  }
  func.func @transform_0(%arg0: i32) -> (i32, i32) {
    %c0_i32 = arith.constant 0 : i32
    %c0_i32_0 = arith.constant 0 : i32
    return %arg0, %c0_i32 : i32, i32
  }
  func.func @transform_1(%arg0: i32) -> (i32, i32) {
    %c0_i32 = arith.constant 0 : i32
    %c0_i32_0 = arith.constant 0 : i32
    %c0_i32_1 = arith.constant 0 : i32
    return %c0_i32, %c0_i32_0 : i32, i32
  }
  func.func @transform_2(%arg0: i32) -> (i32, i32) {
    %c0_i32 = arith.constant 0 : i32
    %c0_i32_0 = arith.constant 0 : i32
    %c0_i32_1 = arith.constant 0 : i32
    return %c0_i32, %c0_i32_0 : i32, i32
  }
  func.func @transform_3(%arg0: i32) -> (i32, i32) {
    %c0_i32 = arith.constant 0 : i32
    %c0_i32_0 = arith.constant 0 : i32
    return %arg0, %c0_i32 : i32, i32
  }
}

</mosaic_0001>

<bundles_post_ra>
// kernel: _slice_left_impl.1
= control target key start
LH: loop header
LB: loop body
LE: loop exit
PB: predicated region body
PF: predicated region fallthrough
CT: control target
= control target key end

     0   :  { %s76_s0 = inlined_call_operand.vmem [shape: f32[8,256], index: 0, kind: input, shape index: {}]   ;;  %s77_s1 = inlined_call_operand.vmem [shape: f32[1,256], index: 1, kind: input, shape index: {}]   ;;  %s78_s2 = inlined_call_operand.vmem [shape: f32[1,256], index: 2, kind: input, shape index: {}]   ;;  %s79_s3 = inlined_call_operand.vmem [shape: f32[8,256], index: 3, kind: output, shape index: {}]  }
   0x1   :  { %v14_v0 = vld [vmem:[%s76_s0] sm:$0xff]  ;;  %v15_v5 = vld [vmem:[%s76_s0 + $0x8] sm:$0xff] }
   0x2   :  { %v16_v1 = vld [vmem:[%s77_s1] sm:$0x3] }
   0x3   :  { %v24_v2 = vld [vmem:[%s78_s2] sm:$0x3]  ;;  %v18_v3 = vperm.slane %v16_v1, 0  ;;  %v19_v6 = vperm.slane %v16_v1, 1 }
   0x4   :  { %v26_v4 = vperm.slane %v24_v2, 0  ;;  %v27_v7 = vperm.slane %v24_v2, 1 }
   0x5   :  { %v22_v8 = vmul.f32 %v18_v3, %v14_v0  ;;  %v23_v9 = vmul.f32 %v19_v6, %v15_v5 }
   0x7   :  { %v30_v10 = vadd.f32 %v26_v4, %v22_v8  ;;  %v31_v11 = vadd.f32 %v27_v7, %v23_v9 }
   0x9   :  { %32 = vst [vmem:[%s79_s3] sm:$0xff] %v30_v10 }
   0xa   :  { %33 = vst [vmem:[%s79_s3 + $0x8] sm:$0xff] %v31_v11 }

</bundles_post_ra>
